<compile_context>
chip_gen: v5e
topology: v5e:2x2
jax: 0.10.0
libtpu: 0.0.40
codegen_flags: <defaults>
</compile_context>

<pallas_src>
import math
from functools import partial

import jax
import jax.numpy as jnp
from jax.experimental import pallas as pl
from jax.experimental.pallas import tpu as pltpu


def _freq_block_kernel(x_ref, w_ref, wc_ref, w1t_ref, w2t_ref,
                       out1_ref, out2_ref, *, f_valid):
    bt, cdim, mtn = x_ref.shape
    fp = w_ref.shape[1]                              # 128-lane packed [sin|cos] width

    x = x_ref[...]                                   # (Bt, C, MTNp)  f32
    x2 = x.reshape(bt * cdim, mtn)                   # leading-dim merge: free

    # ---- single MXU pass: correlation with the packed [sin|cos] templates ----
    r = jnp.dot(x2, w_ref[...], preferred_element_type=jnp.float32)   # (Bt*C, Fp)
    r2 = r * r                                       # lanes [0,F)=sin^2, [F,2F)=cos^2, rest 0

    # Align cos^2 with sin^2 via circular lane rolls (XLU slot; VALU has slack).
    # Symmetric double-roll is roll-direction agnostic: one roll lands the
    # cos^2 block on lanes [0,F), the other lands the zero-padded block there.
    r2s = (r2
           + pltpu.roll(r2, f_valid, axis=1)
           + pltpu.roll(r2, fp - f_valid, axis=1))
    col = jax.lax.broadcasted_iota(jnp.int32, r2s.shape, 1)
    xy = jnp.where(col < f_valid, r2s, 0.0)          # (Bt*C, Fp); padded lanes exactly 0
    xy3 = xy.reshape(bt, cdim, fp)                   # (Bt, C, Fp)

    # ---- squeeze-excite channel gate, batched across the Bt block ----
    # Padded lanes are exactly zero, so summing over Fp == summing over F.
    y = jnp.sum(xy3, axis=2) * (1.0 / f_valid)       # (Bt, C)  mean over valid F
    h = jnp.maximum(
        jnp.dot(y, w1t_ref[...], preferred_element_type=jnp.float32), 0.0)   # (Bt, Cr)
    z = jax.nn.sigmoid(
        jnp.dot(h, w2t_ref[...], preferred_element_type=jnp.float32))        # (Bt, C)

    out1_ref[...] = (x * z[:, :, None]).astype(out1_ref.dtype)   # lane-dense (Bt, C, MTNp)

    # ---- softmax over the VALID frequency lanes ----
    # xy >= 0 everywhere and padded lanes are 0, so the unmasked max is the valid max.
    m = jnp.max(xy3, axis=2, keepdims=True)                                   # (Bt, C, 1)
    col3 = jax.lax.broadcasted_iota(jnp.int32, xy3.shape, 2)
    e = jnp.where(col3 < f_valid, jnp.exp(xy3 - m), 0.0)                      # padded -> 0
    inv = pl.reciprocal(jnp.sum(e, axis=2, keepdims=True), approx=True)       # EUP, not VALU
    sm = e * inv                                                              # (Bt, C, Fp)

    # ---- wc-weighted channel average: VPU multiply + XLU sublane reduce ----
    out2 = jnp.sum(sm * wc_ref[...], axis=1, keepdims=True)                   # (Bt, 1, Fp)
    out2_ref[...] = out2.astype(out2_ref.dtype)


def _vmem_capacity_bytes():
    """Per-core VMEM capacity (generation aware) with a conservative fallback."""
    try:
        cap = getattr(pltpu.get_tpu_info(), "vmem_capacity_bytes", None)
        if cap:
            return int(cap)
    except Exception:
        pass
    return 64 << 20                                   # v7x per-TensorCore VMEM


def _pick_block_batch(B, C, MTNp, itemsize, vmem_budget, fixed_bytes,
                      min_split_tile=8 << 20):
    """Largest divisor of B whose double-buffered (x + out1) tiles plus the
    resident operands fit the VMEM budget.  Keep >= 2 grid steps (v7x megacore)
    only when each step still moves a sizeable tile; otherwise a single big
    step wins (grid steps are a serial loop on 1-TC chips)."""
    feas = []
    for bt in range(1, B + 1):
        if B % bt:
            continue
        tile = bt * C * MTNp * itemsize
        if 4 * tile + fixed_bytes <= vmem_budget:     # in + out, double-buffered
            feas.append(bt)
    if not feas:
        return 1
    split = [bt for bt in feas
             if B // bt >= 2 and bt * C * MTNp * itemsize >= min_split_tile]
    return max(split) if split else max(feas)


def freq_block_forward(x, wx, pe_sin_tf, pe_cos_tf, wc, w1, w2):
    """x: (B, C, M, TN) f32.  Returns (gated_x, freq_attention)."""
    B, C, M, TN = x.shape
    TN_, F = pe_sin_tf.shape
    assert TN_ == TN
    Cr = w1.shape[0]
    MTN = M * TN
    MTNp = ((MTN + 127) // 128) * 128                 # lane/K pad: unmasked stores, aligned MXU K
    Fp = 128
    assert 2 * F <= Fp, "packed [sin|cos] templates must fit one 128-lane block"
    # TODO(synk): for F > 64, fall back to the two-block (MTN, 2*Fp) template layout.

    x2 = x.reshape(B, C, MTN).astype(jnp.float32)
    if MTNp != MTN:
        x2 = jnp.pad(x2, ((0, 0), (0, 0), (0, MTNp - MTN)))

    # Fold wx into the templates; pack [sin | cos] into ONE 128-lane block
    # (halves the dominant template HBM stream and the MXU N-width vs 2*Fp).
    w_sin = (wx[:, None, None].astype(jnp.float32)
             * pe_sin_tf[None].astype(jnp.float32)).reshape(MTN, F)
    w_cos = (wx[:, None, None].astype(jnp.float32)
             * pe_cos_tf[None].astype(jnp.float32)).reshape(MTN, F)
    w_all = jnp.zeros((MTNp, Fp), jnp.float32)
    w_all = w_all.at[:MTN, :F].set(w_sin).at[:MTN, F:2 * F].set(w_cos)

    wc3 = wc.reshape(1, C, 1).astype(jnp.float32)     # sublane layout: no in-kernel relayout
    w1t = w1.T.astype(jnp.float32)                    # (C, Cr)   y @ w1.T
    w2t = w2.T.astype(jnp.float32)                    # (Cr, C)   h @ w2.T

    itemsize = 4
    fixed_bytes = 2 * MTNp * Fp * itemsize + (4 << 20)   # resident templates + slack
    vmem_cap = _vmem_capacity_bytes()
    vmem_budget = min(int(vmem_cap * 3 // 4), 112 << 20) # ~48 MiB v7x, ~96 MiB v5e/v6e

    Bt = _pick_block_batch(B, C, MTNp, itemsize, vmem_budget, fixed_bytes)
    grid = (B // Bt,)

    tile_bytes = Bt * C * MTNp * itemsize
    vmem_limit = int(min(max(4 * tile_bytes + fixed_bytes + (8 << 20), 16 << 20),
                         vmem_budget))

    kernel = partial(_freq_block_kernel, f_valid=F)

    out1_flat, out2_pad = pl.pallas_call(
        kernel,
        out_shape=(
            jax.ShapeDtypeStruct((B, C, MTNp), jnp.float32),
            jax.ShapeDtypeStruct((B, 1, Fp), jnp.float32),
        ),
        grid=grid,
        in_specs=[
            pl.BlockSpec((Bt, C, MTNp), lambda b: (b, 0, 0)),
            pl.BlockSpec((MTNp, Fp), lambda b: (0, 0)),
            pl.BlockSpec((1, C, 1), lambda b: (0, 0, 0)),
            pl.BlockSpec((C, Cr), lambda b: (0, 0)),
            pl.BlockSpec((Cr, C), lambda b: (0, 0)),
        ],
        out_specs=(
            pl.BlockSpec((Bt, C, MTNp), lambda b: (b, 0, 0)),
            pl.BlockSpec((Bt, 1, Fp), lambda b: (b, 0, 0)),
        ),
        compiler_params=pltpu.CompilerParams(
            dimension_semantics=("parallel",),
            vmem_limit_bytes=vmem_limit),
    )(x2, w_all, wc3, w1t, w2t)

    out1 = out1_flat[:, :, :MTN].reshape(B, C, M, TN)
    out2 = out2_pad[:, :, :F]
    return out1, out2


def reference_forward(x, wx, pe_sin_tf, pe_cos_tf, wc, w1, w2):
    xs = jnp.einsum('bcmt,m->bct', x, wx)
    xy = (jnp.einsum('bct,tf->bcf', xs, pe_sin_tf) ** 2
          + jnp.einsum('bct,tf->bcf', xs, pe_cos_tf) ** 2)
    y = jnp.mean(xy, axis=2)
    h = jax.nn.relu(y @ w1.T)
    z = jax.nn.sigmoid(h @ w2.T)
    out1 = x * z[:, :, None, None]
    sm = jax.nn.softmax(xy, axis=-1)
    out2 = jnp.einsum('bcf,c->bf', sm, wc)[:, None, :]
    return out1, out2


if __name__ == "__main__":
    # Module hyper-parameters (defaults except reduction=4 so C // reduction > 1).
    B, C, M, TN, H, Fs, reduction = 2, 16, 10, 50, 3, 250, 4
    F = 40
    Cr = C // reduction

    key = jax.random.PRNGKey(0)
    kx, kwx, kwy, kw1, kw2 = jax.random.split(key, 5)

    # Deterministic parameter init (synthetic; matches PyTorch param shapes).
    wx = jax.random.normal(kwx, (M,), dtype=jnp.float32)            # nn.Parameter(randn(M))
    wy = jax.random.normal(kwy, (H,), dtype=jnp.float32)            # nn.Parameter(randn(H))
    wc = jnp.ones((C,), dtype=jnp.float32) / C                      # ones(C)/C
    w1 = jax.random.normal(kw1, (Cr, C), dtype=jnp.float32) * 0.3   # Linear(C, C//r), no bias
    w2 = jax.random.normal(kw2, (C, Cr), dtype=jnp.float32) * 0.3   # Linear(C//r, C), no bias

    # Fixed sinusoidal reference templates (pe_sin / pe_cos) + wy contraction.
    freq_list = jnp.linspace(8.0, 15.8, F).astype(jnp.float32)       # (F,)
    position = (jnp.arange(TN, dtype=jnp.float32)[:, None] / Fs)     # (TN, 1)
    pe_sin = jnp.stack(
        [jnp.sin(2.0 * math.pi * position * freq_list * (i + 1)) for i in range(H)], axis=0)
    pe_cos = jnp.stack(
        [jnp.cos(2.0 * math.pi * position * freq_list * (i + 1)) for i in range(H)], axis=0)
    # einsum('htf,h->ft') transposed to (TN, F) so the kernel contracts time directly.
    pe_sin_tf = jnp.einsum('htf,h->tf', pe_sin, wy)                  # (TN, F)
    pe_cos_tf = jnp.einsum('htf,h->tf', pe_cos, wy)                  # (TN, F)

    # Example input (B, C, M, TN), modest scale.
    x = jax.random.normal(kx, (B, C, M, TN), dtype=jnp.float32) * 0.1

    out1, out2 = freq_block_forward(x, wx, pe_sin_tf, pe_cos_tf, wc, w1, w2)
    jax.block_until_ready((out1, out2))

    ref1, ref2 = reference_forward(x, wx, pe_sin_tf, pe_cos_tf, wc, w1, w2)
    assert out1.shape == (B, C, M, TN) and out2.shape == (B, 1, F)
    assert jnp.allclose(out1, ref1, rtol=1e-2, atol=1e-2), "out1 mismatch"
    assert jnp.allclose(out2, ref2, rtol=1e-2, atol=1e-2), "out2 mismatch"

    print("KERNEL_OK")
</pallas_src>

<mosaic_0001>
module attributes {stable_mosaic.version = 11 : i64} {
  func.func @_freq_block_kernel(%arg0: i32, %arg1: memref<2x16x512xf32, #tpu.memory_space<vmem>>, %arg2: memref<512x128xf32, #tpu.memory_space<vmem>>, %arg3: memref<1x16x1xf32, #tpu.memory_space<vmem>>, %arg4: memref<16x4xf32, #tpu.memory_space<vmem>>, %arg5: memref<4x16xf32, #tpu.memory_space<vmem>>, %arg6: memref<2x16x512xf32, #tpu.memory_space<vmem>>, %arg7: memref<2x1x128xf32, #tpu.memory_space<vmem>>) attributes {dimension_semantics = [#tpu.dimension_semantics<parallel>], iteration_bounds = array<i64: 1>, scalar_prefetch = 0 : i64, scratch_operands = 0 : i64, tpu.core_type = #tpu.core_type<tc>, window_params = [{transform_indices = @transform_0, window_bounds = array<i64: 2, 16, 512>}, {pipeline_mode = #tpu.pipeline_mode<synchronous>, transform_indices = @transform_1, window_bounds = array<i64: 512, 128>}, {pipeline_mode = #tpu.pipeline_mode<synchronous>, transform_indices = @transform_2, window_bounds = array<i64: 1, 16, 1>}, {pipeline_mode = #tpu.pipeline_mode<synchronous>, transform_indices = @transform_3, window_bounds = array<i64: 16, 4>}, {pipeline_mode = #tpu.pipeline_mode<synchronous>, transform_indices = @transform_4, window_bounds = array<i64: 4, 16>}, {transform_indices = @transform_5, window_bounds = array<i64: 2, 16, 512>}, {transform_indices = @transform_6, window_bounds = array<i64: 2, 1, 128>}]} {
    %c0 = arith.constant 0 : index
    %c0_0 = arith.constant 0 : index
    %c0_1 = arith.constant 0 : index
    %0 = vector.load %arg1[%c0, %c0_0, %c0_1] : memref<2x16x512xf32, #tpu.memory_space<vmem>>, vector<2x16x512xf32>
    %1 = vector.shape_cast %0 : vector<2x16x512xf32> to vector<32x512xf32>
    %c0_2 = arith.constant 0 : index
    %c0_3 = arith.constant 0 : index
    %2 = vector.load %arg2[%c0_2, %c0_3] : memref<512x128xf32, #tpu.memory_space<vmem>>, vector<512x128xf32>
    %cst = arith.constant dense<0.000000e+00> : vector<32x128xf32>
    %3 = tpu.matmul %1, %2, %cst {dimension_numbers = #tpu.dot_dimension_numbers<[1], [0], [0], [1], [0, 0, 1, 1], [], []>} : vector<32x512xf32>, vector<512x128xf32>, vector<32x128xf32> -> vector<32x128xf32>
    %4 = arith.mulf %3, %3 : vector<32x128xf32>
    %c40_i32 = arith.constant 40 : i32
    %5 = tpu.dynamic_rotate %4 by %c40_i32 dim 1 : vector<32x128xf32>, i32 -> vector<32x128xf32>
    %6 = arith.addf %4, %5 : vector<32x128xf32>
    %c88_i32 = arith.constant 88 : i32
    %7 = tpu.dynamic_rotate %4 by %c88_i32 dim 1 : vector<32x128xf32>, i32 -> vector<32x128xf32>
    %8 = arith.addf %6, %7 : vector<32x128xf32>
    %9 = tpu.iota {dimensions = array<i32: 1>} : vector<32x128xi32>
    %c40_i32_4 = arith.constant 40 : i32
    %10 = vector.broadcast %c40_i32_4 : i32 to vector<32x128xi32>
    %11 = arith.cmpi slt, %9, %10 : vector<32x128xi32>
    %cst_5 = arith.constant 0.000000e+00 : f32
    %12 = vector.broadcast %cst_5 : f32 to vector<32x128xf32>
    %13 = arith.select %11, %8, %12 : vector<32x128xi1>, vector<32x128xf32>
    %14 = vector.shape_cast %13 : vector<32x128xf32> to vector<2x16x128xf32>
    %cst_6 = arith.constant dense<0.000000e+00> : vector<2x16xf32>
    %15 = vector.multi_reduction <add>, %14, %cst_6 [2] : vector<2x16x128xf32> to vector<2x16xf32>
    %cst_7 = arith.constant 2.500000e-02 : f32
    %16 = vector.broadcast %cst_7 : f32 to vector<2x16xf32>
    %17 = arith.mulf %15, %16 : vector<2x16xf32>
    %c0_8 = arith.constant 0 : index
    %c0_9 = arith.constant 0 : index
    %18 = vector.load %arg4[%c0_8, %c0_9] : memref<16x4xf32, #tpu.memory_space<vmem>>, vector<16x4xf32>
    %cst_10 = arith.constant dense<0.000000e+00> : vector<2x4xf32>
    %19 = tpu.matmul %17, %18, %cst_10 {dimension_numbers = #tpu.dot_dimension_numbers<[1], [0], [0], [1], [0, 0, 1, 1], [], []>} : vector<2x16xf32>, vector<16x4xf32>, vector<2x4xf32> -> vector<2x4xf32>
    %cst_11 = arith.constant 0.000000e+00 : f32
    %20 = vector.broadcast %cst_11 : f32 to vector<2x4xf32>
    %21 = arith.maximumf %19, %20 : vector<2x4xf32>
    %c0_12 = arith.constant 0 : index
    %c0_13 = arith.constant 0 : index
    %22 = vector.load %arg5[%c0_12, %c0_13] : memref<4x16xf32, #tpu.memory_space<vmem>>, vector<4x16xf32>
    %cst_14 = arith.constant dense<0.000000e+00> : vector<2x16xf32>
    %23 = tpu.matmul %21, %22, %cst_14 {dimension_numbers = #tpu.dot_dimension_numbers<[1], [0], [0], [1], [0, 0, 1, 1], [], []>} : vector<2x4xf32>, vector<4x16xf32>, vector<2x16xf32> -> vector<2x16xf32>
    %24 = arith.negf %23 : vector<2x16xf32>
    %25 = math.exp %24 : vector<2x16xf32>
    %cst_15 = arith.constant 1.000000e+00 : f32
    %26 = vector.broadcast %cst_15 : f32 to vector<2x16xf32>
    %27 = arith.addf %26, %25 : vector<2x16xf32>
    %28 = arith.divf %26, %27 : vector<2x16xf32>
    %29 = vector.shape_cast %28 : vector<2x16xf32> to vector<2x16x1xf32>
    %30 = vector.broadcast %29 : vector<2x16x1xf32> to vector<2x16x512xf32>
    %31 = arith.mulf %0, %30 : vector<2x16x512xf32>
    %c0_16 = arith.constant 0 : index
    %c0_17 = arith.constant 0 : index
    %c0_18 = arith.constant 0 : index
    %32 = vector.load %arg6[%c0_16, %c0_17, %c0_18] : memref<2x16x512xf32, #tpu.memory_space<vmem>>, vector<2x16x512xf32>
    tpu.vector_store %arg6[%c0_16, %c0_17, %c0_18], %31 {strides = array<i32>} : memref<2x16x512xf32, #tpu.memory_space<vmem>>, vector<2x16x512xf32>,
    %cst_19 = arith.constant dense<0xFF800000> : vector<2x16xf32>
    %33 = vector.multi_reduction <maximumf>, %14, %cst_19 [2] : vector<2x16x128xf32> to vector<2x16xf32>
    %34 = vector.shape_cast %33 : vector<2x16xf32> to vector<2x16x1xf32>
    %35 = tpu.iota {dimensions = array<i32: 2>} : vector<2x16x128xi32>
    %c40_i32_20 = arith.constant 40 : i32
    %36 = vector.broadcast %c40_i32_20 : i32 to vector<2x16x128xi32>
    %37 = arith.cmpi slt, %35, %36 : vector<2x16x128xi32>
    %38 = vector.broadcast %34 : vector<2x16x1xf32> to vector<2x16x128xf32>
    %39 = arith.subf %14, %38 : vector<2x16x128xf32>
    %40 = math.exp %39 : vector<2x16x128xf32>
    %cst_21 = arith.constant 0.000000e+00 : f32
    %41 = vector.broadcast %cst_21 : f32 to vector<2x16x128xf32>
    %42 = arith.select %37, %40, %41 : vector<2x16x128xi1>, vector<2x16x128xf32>
    %cst_22 = arith.constant dense<0.000000e+00> : vector<2x16xf32>
    %43 = vector.multi_reduction <add>, %42, %cst_22 [2] : vector<2x16x128xf32> to vector<2x16xf32>
    %44 = vector.shape_cast %43 : vector<2x16xf32> to vector<2x16x1xf32>
    %45 = tpu.reciprocal %44 {approx = true} : vector<2x16x1xf32> -> vector<2x16x1xf32>
    %46 = vector.broadcast %45 : vector<2x16x1xf32> to vector<2x16x128xf32>
    %47 = arith.mulf %42, %46 : vector<2x16x128xf32>
    %c0_23 = arith.constant 0 : index
    %c0_24 = arith.constant 0 : index
    %c0_25 = arith.constant 0 : index
    %48 = vector.load %arg3[%c0_23, %c0_24, %c0_25] : memref<1x16x1xf32, #tpu.memory_space<vmem>>, vector<1x16x1xf32>
    %49 = vector.broadcast %48 : vector<1x16x1xf32> to vector<2x16x128xf32>
    %50 = arith.mulf %47, %49 : vector<2x16x128xf32>
    %cst_26 = arith.constant dense<0.000000e+00> : vector<2x128xf32>
    %51 = vector.multi_reduction <add>, %50, %cst_26 [1] : vector<2x16x128xf32> to vector<2x128xf32>
    %52 = vector.shape_cast %51 : vector<2x128xf32> to vector<2x1x128xf32>
    %c0_27 = arith.constant 0 : index
    %c0_28 = arith.constant 0 : index
    %c0_29 = arith.constant 0 : index
    %53 = vector.load %arg7[%c0_27, %c0_28, %c0_29] : memref<2x1x128xf32, #tpu.memory_space<vmem>>, vector<2x1x128xf32>
    tpu.vector_store %arg7[%c0_27, %c0_28, %c0_29], %52 {strides = array<i32>} : memref<2x1x128xf32, #tpu.memory_space<vmem>>, vector<2x1x128xf32>,
    return
  }
  func.func @transform_0(%arg0: i32) -> (i32, i32, i32) {
    %c0_i32 = arith.constant 0 : i32
    %c0_i32_0 = arith.constant 0 : i32
    %c0_i32_1 = arith.constant 0 : i32
    return %arg0, %c0_i32, %c0_i32_0 : i32, i32, i32
  }
  func.func @transform_1(%arg0: i32) -> (i32, i32) {
    %c0_i32 = arith.constant 0 : i32
    %c0_i32_0 = arith.constant 0 : i32
    %c0_i32_1 = arith.constant 0 : i32
    return %c0_i32, %c0_i32_0 : i32, i32
  }
  func.func @transform_2(%arg0: i32) -> (i32, i32, i32) {
    %c0_i32 = arith.constant 0 : i32
    %c0_i32_0 = arith.constant 0 : i32
    %c0_i32_1 = arith.constant 0 : i32
    %c0_i32_2 = arith.constant 0 : i32
    return %c0_i32, %c0_i32_0, %c0_i32_1 : i32, i32, i32
  }
  func.func @transform_3(%arg0: i32) -> (i32, i32) {
    %c0_i32 = arith.constant 0 : i32
    %c0_i32_0 = arith.constant 0 : i32
    %c0_i32_1 = arith.constant 0 : i32
    return %c0_i32, %c0_i32_0 : i32, i32
  }
  func.func @transform_4(%arg0: i32) -> (i32, i32) {
    %c0_i32 = arith.constant 0 : i32
    %c0_i32_0 = arith.constant 0 : i32
    %c0_i32_1 = arith.constant 0 : i32
    return %c0_i32, %c0_i32_0 : i32, i32
  }
  func.func @transform_5(%arg0: i32) -> (i32, i32, i32) {
    %c0_i32 = arith.constant 0 : i32
    %c0_i32_0 = arith.constant 0 : i32
    %c0_i32_1 = arith.constant 0 : i32
    return %arg0, %c0_i32, %c0_i32_0 : i32, i32, i32
  }
  func.func @transform_6(%arg0: i32) -> (i32, i32, i32) {
    %c0_i32 = arith.constant 0 : i32
    %c0_i32_0 = arith.constant 0 : i32
    %c0_i32_1 = arith.constant 0 : i32
    return %arg0, %c0_i32, %c0_i32_0 : i32, i32, i32
  }
}

</mosaic_0001>

<bundles_post_ra>
// kernel: tpu_custom_call.1
= control target key start
LH: loop header
LB: loop body
LE: loop exit
PB: predicated region body
PF: predicated region fallthrough
CT: control target
= control target key end

     0   :  { %12 = vsyncpa [#allocation3], 0  ;;  %s884_s0 = inlined_call_operand.hbm [shape: f32[2,16,512], index: 0, kind: input, shape index: {}]   ;;  %s885_s1 = inlined_call_operand.hbm [shape: f32[512,128], index: 1, kind: input, shape index: {}]   ;;  %s886_s2 = inlined_call_operand.vmem [shape: f32[1,16,1], index: 2, kind: input, shape index: {}]   ;;  %s887_s3 = inlined_call_operand.vmem [shape: f32[16,4], index: 3, kind: input, shape index: {}]   ;;  %s888_s4 = inlined_call_operand.vmem [shape: f32[4,16], index: 4, kind: input, shape index: {}]   ;;  %s889_s5 = inlined_call_operand.hbm [shape: f32[2,16,512], index: 5, kind: output, shape index: {0}]   ;;  %s890_s6 = inlined_call_operand.hbm [shape: f32[2,1,128], index: 6, kind: output, shape index: {1}]  }
   0x1   :  { %13 = vsyncpa [#allocation6], 0 }
   0x2   :  { %14 = vsyncpa [#allocation4], 0 }
   0x3   :  { %15 = vsyncpa [#allocation9], 0  ;;  %s20_s23 = sshll.u32 %s884_s0, 4  ;;  %s703_s24 = smov [#allocation2]   ;;  %s21_s23 = int_to_ptr.hbm [resolvable:$true] %s20_s23 }
   0x4   :  { %s22_s25 = sshll.u32 %s703_s24, 4  ;;  %s33_s28 = sshll.u32 %s885_s1, 4  ;;  %s23_s25 = int_to_ptr.vmem [resolvable:$true] %s22_s25  ;;  %s34_s28 = int_to_ptr.hbm [resolvable:$true] %s33_s28 }
   0x5   :  { %s704_s29 = smov 512   ;;  %s705_s30 = smov 32  }
   0x6   :  { %28 = dma.hbm_to_vmem [thread:$0]  %s21_s23, 2048, %s23_s25, [#allocation3], %s704_s29, %s704_s29, %s705_s30  }
   0x7   :  { %s706_s7 = smov [#allocation5]   ;;  %s707_s9 = smov 128  }
   0x8   :  { %s35_s8 = sshll.u32 %s706_s7, 4  ;;  %s708_s0 = smov 8   ;;  %s36_s8 = int_to_ptr.vmem [resolvable:$true] %s35_s8 }
   0x9   :  { %41 = dma.hbm_to_vmem [thread:$0]  %s34_s28, 8192, %s36_s8, [#allocation6], %s707_s9, %s707_s9, %s708_s0  }
   0xa   :  { %695 = dma.done.wait [#allocation3], 2048  }
   0xb   :  { %696 = vsyncadd [#allocation3], 4294965248 }
   0xc   :  { %697 = dma.done.wait [#allocation6], 8192  }
   0xd   :  { %698 = vsyncadd [#allocation6], 4294959104  ;;  %v119_v0 = vld [vmem:[#allocation5 + $0x178] sm:$0xff]  ;;  %v118_v1 = vld [vmem:[#allocation5 + $0x170] sm:$0xff]  ;;  %s709_s1 = smov 88   ;;  %s710_s10 = smov 40  }
   0xe   :  { %v135_v2 = vld [vmem:[#allocation5 + $0x1f8] sm:$0xff]  ;;  %194 = vmatpush.msra.mxu2 %v119_v0  ;;  %v117_v5 = vld [vmem:[#allocation5 + $0x168] sm:$0xff]  ;;  %v134_v6 = vld [vmem:[#allocation5 + $0x1f0] sm:$0xff]  ;;  %vm344_vm1 = vcmask 1043456   ;;  %vm308_vm2 = vcmask 130112   ;;  %vm313_vm3 = vcmask 1041409  }
   0xf   :  { %223 = vmatpush.msra.mxu3 %v135_v2  ;;  %v87_v3 = vld [vmem:[#allocation5 + $0x78] sm:$0xff]  ;;  %v86_v7 = vld [vmem:[#allocation5 + $0x70] sm:$0xff]  ;;  %v133_v9 = vld [vmem:[#allocation5 + $0x1e8] sm:$0xff]  ;;  %vm315_vm4 = vcmask 130048   ;;  %vm340_vm5 = vcmask 31744   ;;  %s536_s22 = sshll.u32 %s890_s6, 4  ;;  %s537_s22 = int_to_ptr.hbm [resolvable:$true] %s536_s22 }
  0x10   :  { %v103_v4 = vld [vmem:[#allocation5 + $0xf8] sm:$0xff]  ;;  %136 = vmatpush.msra.mxu0 %v87_v3  ;;  %v102_v8 = vld [vmem:[#allocation5 + $0xf0] sm:$0xff]  ;;  %195 = vmatpush.msra.mxu2 %v118_v1  ;;  %v85_v10 = vld [vmem:[#allocation5 + $0x68] sm:$0xff]  ;;  %s713_s23 = smov 16   ;;  %s714_s24 = smov 1  }
  0x11   :  { %165 = vmatpush.msra.mxu1 %v103_v4  ;;  %224 = vmatpush.msra.mxu3 %v134_v6  ;;  %v116_v11 = vld [vmem:[#allocation5 + $0x160] sm:$0xff]  ;;  %v101_v12 = vld [vmem:[#allocation5 + $0xe8] sm:$0xff]  ;;  %v115_v16 = vld [vmem:[#allocation5 + $0x158] sm:$0xff]  ;;  %s715_s6 = smov [#allocation7]   ;;  %s523_s28 = sshll.u32 %s889_s5, 4  ;;  %s524_s28 = int_to_ptr.hbm [resolvable:$true] %s523_s28 }
  0x12   :  { %137 = vmatpush.msra.mxu0 %v86_v7  ;;  %v132_v13 = vld [vmem:[#allocation5 + $0x1e0] sm:$0xff]  ;;  %196 = vmatpush.msra.mxu2 %v117_v5  ;;  %v131_v17 = vld [vmem:[#allocation5 + $0x1d8] sm:$0xff]  ;;  %v114_v20 = vld [vmem:[#allocation5 + $0x150] sm:$0xff]  ;;  %s521_s25 = sshll.u32 %s715_s6, 4  ;;  %s522_s25 = int_to_ptr.vmem [resolvable:$true] %s521_s25 }
  0x13   :  { %166 = vmatpush.msra.mxu1 %v102_v8  ;;  %225 = vmatpush.msra.mxu3 %v133_v9  ;;  %v84_v14 = vld [vmem:[#allocation5 + $0x60] sm:$0xff]  ;;  %v83_v18 = vld [vmem:[#allocation5 + $0x58] sm:$0xff]  ;;  %v130_v21 = vld [vmem:[#allocation5 + $0x1d0] sm:$0xff] }
  0x14   :  { %v100_v15 = vld [vmem:[#allocation5 + $0xe0] sm:$0xff]  ;;  %138 = vmatpush.msra.mxu0 %v85_v10  ;;  %197 = vmatpush.msra.mxu2 %v116_v11  ;;  %v99_v19 = vld [vmem:[#allocation5 + $0xd8] sm:$0xff]  ;;  %v82_v22 = vld [vmem:[#allocation5 + $0x50] sm:$0xff] }
  0x15   :  { %167 = vmatpush.msra.mxu1 %v101_v12  ;;  %226 = vmatpush.msra.mxu3 %v132_v13  ;;  %v98_v23 = vld [vmem:[#allocation5 + $0xd0] sm:$0xff]  ;;  %v113_v24 = vld [vmem:[#allocation5 + $0x148] sm:$0xff]  ;;  %v112_v28 = vld [vmem:[#allocation5 + $0x140] sm:$0xff] }
  0x16   :  { %139 = vmatpush.msra.mxu0 %v84_v14  ;;  %198 = vmatpush.msra.mxu2 %v115_v16  ;;  %v129_v25 = vld [vmem:[#allocation5 + $0x1c8] sm:$0xff]  ;;  %v128_v29 = vld [vmem:[#allocation5 + $0x1c0] sm:$0xff]  ;;  %v111_v32 = vld [vmem:[#allocation5 + $0x138] sm:$0xff] }
  0x17   :  { %168 = vmatpush.msra.mxu1 %v100_v15  ;;  %227 = vmatpush.msra.mxu3 %v131_v17  ;;  %v81_v26 = vld [vmem:[#allocation5 + $0x48] sm:$0xff]  ;;  %v80_v30 = vld [vmem:[#allocation5 + $0x40] sm:$0xff]  ;;  %v127_v33 = vld [vmem:[#allocation5 + $0x1b8] sm:$0xff] }
  0x18   :  { %140 = vmatpush.msra.mxu0 %v83_v18  ;;  %199 = vmatpush.msra.mxu2 %v114_v20  ;;  %v97_v27 = vld [vmem:[#allocation5 + $0xc8] sm:$0xff]  ;;  %v96_v31 = vld [vmem:[#allocation5 + $0xc0] sm:$0xff]  ;;  %v79_v34 = vld [vmem:[#allocation5 + $0x38] sm:$0xff] }
  0x19   :  { %169 = vmatpush.msra.mxu1 %v99_v19  ;;  %228 = vmatpush.msra.mxu3 %v130_v21  ;;  %v95_v35 = vld [vmem:[#allocation5 + $0xb8] sm:$0xff]  ;;  %v110_v36 = vld [vmem:[#allocation5 + $0x130] sm:$0xff]  ;;  %v109_v40 = vld [vmem:[#allocation5 + $0x128] sm:$0xff] }
  0x1a   :  { %141 = vmatpush.msra.mxu0 %v82_v22  ;;  %200 = vmatpush.msra.mxu2 %v113_v24  ;;  %v126_v37 = vld [vmem:[#allocation5 + $0x1b0] sm:$0xff]  ;;  %v125_v41 = vld [vmem:[#allocation5 + $0x1a8] sm:$0xff]  ;;  %v108_v44 = vld [vmem:[#allocation5 + $0x120] sm:$0xff] }
  0x1b   :  { %170 = vmatpush.msra.mxu1 %v98_v23  ;;  %229 = vmatpush.msra.mxu3 %v129_v25  ;;  %v78_v38 = vld [vmem:[#allocation5 + $0x30] sm:$0xff]  ;;  %v77_v42 = vld [vmem:[#allocation5 + $0x28] sm:$0xff]  ;;  %v124_v45 = vld [vmem:[#allocation5 + $0x1a0] sm:$0xff] }
  0x1c   :  { %142 = vmatpush.msra.mxu0 %v81_v26  ;;  %201 = vmatpush.msra.mxu2 %v112_v28  ;;  %v94_v39 = vld [vmem:[#allocation5 + $0xb0] sm:$0xff]  ;;  %v93_v43 = vld [vmem:[#allocation5 + $0xa8] sm:$0xff]  ;;  %v76_v46 = vld [vmem:[#allocation5 + $0x20] sm:$0xff] }
  0x1d   :  { %171 = vmatpush.msra.mxu1 %v97_v27  ;;  %230 = vmatpush.msra.mxu3 %v128_v29  ;;  %v92_v47 = vld [vmem:[#allocation5 + $0xa0] sm:$0xff]  ;;  %v107_v48 = vld [vmem:[#allocation5 + $0x118] sm:$0xff]  ;;  %v106_v52 = vld [vmem:[#allocation5 + $0x110] sm:$0xff] }
  0x1e   :  { %143 = vmatpush.msra.mxu0 %v80_v30  ;;  %202 = vmatpush.msra.mxu2 %v111_v32  ;;  %v123_v49 = vld [vmem:[#allocation5 + $0x198] sm:$0xff]  ;;  %v122_v53 = vld [vmem:[#allocation5 + $0x190] sm:$0xff]  ;;  %v105_v56 = vld [vmem:[#allocation5 + $0x108] sm:$0xff] }
  0x1f   :  { %172 = vmatpush.msra.mxu1 %v96_v31  ;;  %231 = vmatpush.msra.mxu3 %v127_v33  ;;  %v75_v50 = vld [vmem:[#allocation5 + $0x18] sm:$0xff]  ;;  %v74_v54 = vld [vmem:[#allocation5 + $0x10] sm:$0xff]  ;;  %v121_v57 = vld [vmem:[#allocation5 + $0x188] sm:$0xff] }
  0x20   :  { %144 = vmatpush.msra.mxu0 %v79_v34  ;;  %203 = vmatpush.msra.mxu2 %v110_v36  ;;  %v91_v51 = vld [vmem:[#allocation5 + $0x98] sm:$0xff]  ;;  %v90_v55 = vld [vmem:[#allocation5 + $0x90] sm:$0xff]  ;;  %v73_v58 = vld [vmem:[#allocation5 + $0x8] sm:$0xff] }
  0x21   :  { %173 = vmatpush.msra.mxu1 %v95_v35  ;;  %232 = vmatpush.msra.mxu3 %v126_v37  ;;  %v89_v59 = vld [vmem:[#allocation5 + $0x88] sm:$0xff]  ;;  %v104_v60 = vld [vmem:[#allocation5 + $0x100] sm:$0xff]  ;;  %v760_v62 = vld [vmem:[#allocation2 + $0x10] sm:$0xff] }
  0x22   :  { %145 = vmatpush.msra.mxu0 %v78_v38  ;;  %204 = vmatpush.msra.mxu2 %v109_v40  ;;  %v120_v61 = vld [vmem:[#allocation5 + $0x180] sm:$0xff]  ;;  %v762_v63 = vld [vmem:[#allocation2 + $0x18] sm:$0xff]  ;;  %v766_v3 = vld [vmem:[#allocation2 + $0x8] sm:$0xff] }
  0x23   :  { %174 = vmatpush.msra.mxu1 %v94_v39  ;;  %233 = vmatpush.msra.mxu3 %v125_v41  ;;  %v72_v0 = vld [vmem:[#allocation5] sm:$0xff]  ;;  %v772_v4 = vld [vmem:[#allocation2 + $0x30] sm:$0xff]  ;;  %v774_v5 = vld [vmem:[#allocation2 + $0x38] sm:$0xff] }
  0x24   :  { %146 = vmatpush.msra.mxu0 %v77_v42  ;;  %205 = vmatpush.msra.mxu2 %v108_v44  ;;  %v88_v1 = vld [vmem:[#allocation5 + $0x80] sm:$0xff]  ;;  %v778_v7 = vld [vmem:[#allocation2 + $0x28] sm:$0xff]  ;;  %v784_v8 = vld [vmem:[#allocation2 + $0x50] sm:$0xff] }
  0x25   :  { %175 = vmatpush.msra.mxu1 %v93_v43  ;;  %234 = vmatpush.msra.mxu3 %v124_v45  ;;  %v764_v2 = vld [vmem:[#allocation2] sm:$0xff]  ;;  %v786_v9 = vld [vmem:[#allocation2 + $0x58] sm:$0xff]  ;;  %v790_v11 = vld [vmem:[#allocation2 + $0x48] sm:$0xff] }
  0x26   :  { %147 = vmatpush.msra.mxu0 %v76_v46  ;;  %206 = vmatpush.msra.mxu2 %v107_v48  ;;  %v776_v6 = vld [vmem:[#allocation2 + $0x20] sm:$0xff]  ;;  %v796_v12 = vld [vmem:[#allocation2 + $0x70] sm:$0xff]  ;;  %v798_v13 = vld [vmem:[#allocation2 + $0x78] sm:$0xff]  ;;  %v280_v48 = vlaneseq }
  0x27   :  { %176 = vmatpush.msra.mxu1 %v92_v47  ;;  %235 = vmatpush.msra.mxu3 %v123_v49  ;;  %v788_v10 = vld [vmem:[#allocation2 + $0x40] sm:$0xff]  ;;  %v802_v15 = vld [vmem:[#allocation2 + $0x68] sm:$0xff] }
  0x28   :  { %148 = vmatpush.msra.mxu0 %v75_v50  ;;  %207 = vmatpush.msra.mxu2 %v106_v52  ;;  %v800_v14 = vld [vmem:[#allocation2 + $0x60] sm:$0xff]  ;;  %v813_v49 = vand.u32 127, %v280_v48 }
  0x29   :  { %177 = vmatpush.msra.mxu1 %v91_v51  ;;  %236 = vmatpush.msra.mxu3 %v122_v53 }
  0x2a   :  { %149 = vmatpush.msra.mxu0 %v74_v54  ;;  %208 = vmatpush.msra.mxu2 %v105_v56  ;;  %vm282_vm0 = vcmp.lt.s32.totalorder %v813_v49, 40 }
  0x2b   :  { %178 = vmatpush.msra.mxu1 %v90_v55  ;;  %237 = vmatpush.msra.mxu3 %v121_v57 }
  0x2c   :  { %150 = vmatpush.msra.mxu0 %v73_v58  ;;  %209 = vmatpush.msra.mxu2 %v104_v60 }
  0x2d   :  { %179 = vmatpush.msra.mxu1 %v89_v59  ;;  %238 = vmatpush.msra.mxu3 %v120_v61 }
  0x2e   :  { %210 = vmatmul.f32.vlgmr.msra.gmra.mxu2 %v760_v62  ;;  %239 = vmatmul.f32.vlgmr.msra.gmra.mxu3 %v762_v63 }
  0x2f   :  { %151 = vmatpush.msra.mxu0 %v72_v0  ;;  %180 = vmatpush.msra.mxu1 %v88_v1 }
  0x30   :  { %152 = vmatmul.f32.vlgmr.msra.gmra.mxu0 %v764_v2  ;;  %181 = vmatmul.f32.vlgmr.msra.gmra.mxu1 %v766_v3 }
  0x36   :  { %213 = vmatmul.f32.gmra.mxu2 %v772_v4  ;;  %242 = vmatmul.f32.gmra.mxu3 %v774_v5 }
  0x38   :  { %155 = vmatmul.f32.gmra.mxu0 %v776_v6  ;;  %184 = vmatmul.f32.gmra.mxu1 %v778_v7 }
  0x3e   :  { %216 = vmatmul.f32.gmra.mxu2 %v784_v8  ;;  %245 = vmatmul.f32.gmra.mxu3 %v786_v9 }
  0x40   :  { %158 = vmatmul.f32.gmra.mxu0 %v788_v10  ;;  %187 = vmatmul.f32.gmra.mxu1 %v790_v11 }
  0x46   :  { %219 = vmatmul.f32.gmra.mxu2 %v796_v12  ;;  %248 = vmatmul.f32.gmra.mxu3 %v798_v13 }
  0x48   :  { %161 = vmatmul.f32.gmra.mxu0 %v800_v14  ;;  %190 = vmatmul.f32.gmra.mxu1 %v802_v15 }
  0xad   :  { %v153_v16 = vpop.f32.mrf.mxu0  ;;  %v182_v17 = vpop.f32.mrf.mxu1 }
  0xae   :  { %v183_v18 = vadd.f32 %v182_v17, %v153_v16  ;;  %v711_v17 = vmov 0  }
  0xaf   :  { %573 = vset.pattern.permute.xlu2 %v711_v17  ;;  %572 = vset.pattern.permute.xlu1 %v711_v17 }
  0xb1   :  { %v211_v19 = vpop.f32.mrf.mxu2  ;;  %v240_v20 = vpop.f32.mrf.mxu3 }
  0xb2   :  { %v212_v21 = vadd.f32 %v211_v19, %v183_v18 }
  0xb4   :  { %v241_v22 = vadd.f32 %v240_v20, %v212_v21 }
  0xb5   :  { %v156_v23 = vpop.f32.mrf.mxu0  ;;  %v185_v24 = vpop.f32.mrf.mxu1 }
  0xb6   :  { %v252_v25 = vmul.f32 %v241_v22, %v241_v22  ;;  %v186_v26 = vadd.f32 %v185_v24, %v156_v23  ;;  %v486_v23 = vld [vmem:[%s886_s2 + $0x8] sm:$0xff] }
  0xb7   :  { %v300_v24 = vld [vmem:[%s887_s3 + $0x8] sm:$0xff] }
  0xb8   :  { %268 = vrot.lane.b32.xlu2 %v252_v25, %s709_s1  ;;  %256 = vrot.lane.b32.xlu0 %v252_v25, %s710_s10 }
  0xb9   :  { %v214_v27 = vpop.f32.mrf.mxu2  ;;  %v243_v28 = vpop.f32.mrf.mxu3  ;;  %332 = vmatpush.msrb.mxu0 %v300_v24 }
  0xba   :  { %v215_v29 = vadd.f32 %v214_v27, %v186_v26  ;;  %v299_v26 = vld [vmem:[%s887_s3] sm:$0xff] }
  0xbb   :  { %333 = vmatpush.msrb.mxu0 %v299_v26 }
  0xbc   :  { %v244_v30 = vadd.f32 %v243_v28, %v215_v29 }
  0xbd   :  { %v159_v31 = vpop.f32.mrf.mxu0  ;;  %v188_v32 = vpop.f32.mrf.mxu1 }
  0xbe   :  { %v253_v33 = vmul.f32 %v244_v30, %v244_v30  ;;  %v189_v34 = vadd.f32 %v188_v32, %v159_v31 }
  0xc0   :  { %270 = vrot.lane.b32.xlu2 %v253_v33, %s709_s1  ;;  %258 = vrot.lane.b32.xlu0 %v253_v33, %s710_s10 }
  0xc1   :  { %v217_v35 = vpop.f32.mrf.mxu2  ;;  %v246_v36 = vpop.f32.mrf.mxu3 }
  0xc2   :  { %v218_v37 = vadd.f32 %v217_v35, %v189_v34  ;;  %v306_v34 = vadd.s32 4294967288, %v813_v49 }
  0xc4   :  { %v247_v38 = vadd.f32 %v246_v36, %v218_v37  ;;  %v339_v36 = vld [vmem:[%s888_s4] sm:$0xf] }
  0xc5   :  { %v162_v39 = vpop.f32.mrf.mxu0  ;;  %v191_v40 = vpop.f32.mrf.mxu1  ;;  %556 = vmatpush.msk.msrb.mxu1 %vm344_vm1, %v339_v36 }
  0xc6   :  { %v254_v41 = vmul.f32 %v247_v38, %v247_v38  ;;  %v192_v42 = vadd.f32 %v191_v40, %v162_v39 }
  0xc8   :  { %272 = vrot.lane.b32.xlu0 %v254_v41, %s709_s1  ;;  %260 = vrot.lane.b32.xlu1 %v254_v41, %s710_s10 }
  0xc9   :  { %v220_v43 = vpop.f32.mrf.mxu2  ;;  %v249_v44 = vpop.f32.mrf.mxu3 }
  0xca   :  { %v221_v45 = vadd.f32 %v220_v43, %v192_v42 }
  0xcc   :  { %v250_v46 = vadd.f32 %v249_v44, %v221_v45 }
  0xce   :  { %v255_v47 = vmul.f32 %v250_v46, %v250_v46 }
  0xd0   :  { %262 = vrot.lane.b32.xlu1 %v255_v47, %s710_s10 }
  0xd8   :  { %274 = vrot.lane.b32.xlu1 %v255_v47, %s709_s1 }
 0x112   :  { %v269_v50 = vpop.permute.xlu2 %268 }
 0x11a   :  { %v271_v57 = vpop.permute.xlu2 %270 }
 0x12a   :  { %v257_v51 = vpop.permute.xlu0 %256 }
 0x12b   :  { %v264_v52 = vadd.f32 %v257_v51, %v252_v25  ;;  %v485_v25 = vld [vmem:[%s886_s2] sm:$0xff]  ;;  %s712_s2 = smov [#allocation8]  }
 0x12c   :  { %s534_s3 = sshll.u32 %s712_s2, 4  ;;  %s535_s3 = int_to_ptr.vmem [resolvable:$true] %s534_s3 }
 0x12d   :  { %v276_v53 = vadd.f32 %v269_v50, %v264_v52 }
 0x12f   :  { %v818_v54 = vsel %vm282_vm0, %v276_v53, 0.0 }
 0x130   :  { %287 = vadd.xlane.f32.xlu2 %v818_v54 }
 0x132   :  { %v259_v55 = vpop.permute.xlu0 %258 }
 0x133   :  { %v265_v56 = vadd.f32 %v259_v55, %v253_v33 }
 0x135   :  { %v277_v58 = vadd.f32 %v271_v57, %v265_v56 }
 0x137   :  { %v284_v59 = vsel %vm282_vm0, %v277_v58, 0.0 }
 0x138   :  { %289 = vadd.xlane.f32.xlu0 %v284_v59 }
 0x13a   :  { %v261_v60 = vpop.permute.xlu1 %260  ;;  %v273_v0 = vpop.permute.xlu0 %272 }
 0x13b   :  { %v266_v61 = vadd.f32 %v261_v60, %v254_v41 }
 0x13d   :  { %v278_v1 = vadd.f32 %v273_v0, %v266_v61 }
 0x13f   :  { %v285_v16 = vsel %vm282_vm0, %v278_v1, 0.0 }
 0x140   :  { %447 = vmax.xlane.f32.xlu0 %v284_v59  ;;  %291 = vadd.xlane.f32.xlu1 %v285_v16 }
 0x142   :  { %v263_v18 = vpop.permute.xlu1 %262 }
 0x143   :  { %v267_v19 = vadd.f32 %v263_v18, %v255_v47 }
 0x148   :  { %449 = vmax.xlane.f32.xlu1 %v285_v16 }
 0x14a   :  { %v275_v20 = vpop.permute.xlu1 %274 }
 0x14b   :  { %v279_v21 = vadd.f32 %v275_v20, %v267_v19 }
 0x14d   :  { %v286_v22 = vsel %vm282_vm0, %v279_v21, 0.0 }
 0x14e   :  { %293 = vadd.xlane.f32.xlu2 %v286_v22 }
 0x156   :  { %445 = vmax.xlane.f32.xlu2 %v818_v54 }
 0x15e   :  { %451 = vmax.xlane.f32.xlu2 %v286_v22 }
 0x161   :  { %489 = vperm.xlu1 %572, %v485_v25  }
 0x176   :  { %494 = vperm.xlu2 %573, %v486_v23  }
 0x1a3   :  { %v288_v31 = vpop.xlane.xlu2 %287 }
 0x1a4   :  { %v295_v38 = vmul.f32 0.025, %v288_v31 }
 0x1a6   :  { %v305_v43 = vperm.slane %v295_v38, %v813_v49 }
 0x1ab   :  { %v290_v27 = vpop.xlane.xlu0 %289 }
 0x1ac   :  { %v296_v35 = vmul.f32 0.025, %v290_v27 }
 0x1ae   :  { %v307_v41 = vperm.slane %v296_v35, %v306_v34 }
 0x1b0   :  { %v309_v46 = vsel %vm308_vm2, %v307_v41, %v305_v43 }
 0x1b3   :  { %v448_v28 = vpop.xlane.xlu0 %447  ;;  %v292_v32 = vpop.xlane.xlu1 %291 }
 0x1b4   :  { %v454_v29 = vsub.f32 %v284_v59, %v448_v28  ;;  %v297_v39 = vmul.f32 0.025, %v292_v32 }
 0x1b6   :  { %v459_v30 = vmul.f32 1.442695, %v454_v29  ;;  %v310_v44 = vperm.slane %v297_v39, %v813_v49 }
 0x1b8   :  { %579 = vpow2.f32 %v459_v30 }
 0x1bb   :  { %v450_v51 = vpop.xlane.xlu1 %449 }
 0x1bc   :  { %v455_v55 = vsub.f32 %v285_v16, %v450_v51 }
 0x1be   :  { %v580_v33 = vpop.eup %579  ;;  %v461_v57 = vmul.f32 1.442695, %v455_v55  ;;  %v389_v55 = vshrl.u32 %v280_v48, 7 }
 0x1bf   :  { %v466_v37 = vsel %vm282_vm0, %v580_v33, 0.0 }
 0x1c0   :  { %471 = vadd.xlane.f32.xlu2 %v466_v37  ;;  %574 = vset.pattern.permute.xlu0 %v389_v55 }
 0x1c1   :  { %v294_v40 = vpop.xlane.xlu2 %293  ;;  %576 = vset.pattern.permute.xlu1 %v389_v55 }
 0x1c2   :  { %v298_v42 = vmul.f32 0.025, %v294_v40 }
 0x1c4   :  { %v311_v45 = vperm.slane %v298_v42, %v306_v34 }
 0x1c6   :  { %v312_v47 = vsel %vm308_vm2, %v311_v45, %v310_v44 }
 0x1c7   :  { %v314_v50 = vsel %vm313_vm3, %v312_v47, %v309_v46 }
 0x1c8   :  { %555 = vmatmul.msk.f32.vlgmr.msrb.gmra.mxu0 %vm315_vm4, %v314_v50 }
 0x1c9   :  { %v446_v52 = vpop.xlane.xlu2 %445 }
 0x1ca   :  { %v453_v53 = vsub.f32 %v818_v54, %v446_v52 }
 0x1cc   :  { %v457_v56 = vmul.f32 1.442695, %v453_v53 }
 0x1ce   :  { %581 = vpow2.f32 %v457_v56  ;;  %v396_v56 = vadd.s32 8, %v389_v55 }
 0x1cf   :  { %583 = vpow2.f32 %v461_v57 }
 0x1d0   :  { %577 = vset.pattern.permute.xlu2 %v396_v56 }
 0x1d1   :  { %v452_v58 = vpop.xlane.xlu2 %451 }
 0x1d2   :  { %v456_v59 = vsub.f32 %v286_v22, %v452_v58 }
 0x1d3   :  { %v490_v20 = vpop.permute.xlu1 %489 }
 0x1d4   :  { %v582_v60 = vpop.eup %581  ;;  %v463_v61 = vmul.f32 1.442695, %v456_v59 }
 0x1d5   :  { %v465_v0 = vsel %vm282_vm0, %v582_v60, 0.0  ;;  %v584_v1 = vpop.eup %583 }
 0x1d6   :  { %585 = vpow2.f32 %v463_v61  ;;  %469 = vadd.xlane.f32.xlu1 %v465_v0  ;;  %v467_v54 = vsel %vm282_vm0, %v584_v1, 0.0 }
 0x1d9   :  { %v495_v16 = vpop.permute.xlu2 %494 }
 0x1dc   :  { %v586_v18 = vpop.eup %585 }
 0x1dd   :  { %v468_v19 = vsel %vm282_vm0, %v586_v18, 0.0 }
 0x1de   :  { %475 = vadd.xlane.f32.xlu2 %v468_v19  ;;  %473 = vadd.xlane.f32.xlu1 %v467_v54 }
 0x233   :  { %v472_v21 = vpop.xlane.xlu2 %471 }
 0x234   :  { %587 = vrcp.f32 %v472_v21 }
 0x23a   :  { %v588_v25 = vpop.eup %587 }
 0x23b   :  { %v482_v26 = vmul.f32 %v588_v25, %v466_v37 }
 0x23d   :  { %v498_v49 = vmul.f32 %v495_v16, %v482_v26 }
 0x245   :  { %v335_v22 = vpop.f32.mrf.mxu0 }
 0x246   :  { %v338_v23 = vmax.f32 %v335_v22, 0.0 }
 0x248   :  { %557 = vmatmul.msk.f32.vlgmr.msrb.gmra.mxu1 %vm340_vm5, %v338_v23 }
 0x249   :  { %v470_v24 = vpop.xlane.xlu1 %469 }
 0x24a   :  { %589 = vrcp.f32 %v470_v24 }
 0x250   :  { %v590_v27 = vpop.eup %589 }
 0x251   :  { %v481_v28 = vmul.f32 %v590_v27, %v465_v0  ;;  %v476_v29 = vpop.xlane.xlu2 %475  ;;  %v474_v30 = vpop.xlane.xlu1 %473 }
 0x252   :  { %591 = vrcp.f32 %v476_v29 }
 0x253   :  { %v497_v31 = vmul.f32 %v490_v20, %v481_v28  ;;  %593 = vrcp.f32 %v474_v30 }
 0x255   :  { %v501_v32 = vadd.f32 %v498_v49, %v497_v31 }
 0x257   :  { %v502_v33 = vrot.slane %v501_v32, 4 }
 0x258   :  { %v592_v34 = vpop.eup %591 }
 0x259   :  { %v594_v35 = vpop.eup %593  ;;  %v503_v36 = vadd.f32 %v502_v33, %v501_v32  ;;  %v484_v38 = vmul.f32 %v592_v34, %v468_v19 }
 0x25a   :  { %v483_v39 = vmul.f32 %v594_v35, %v467_v54 }
 0x25b   :  { %v504_v40 = vrot.slane %v503_v36, 2  ;;  %v500_v41 = vmul.f32 %v495_v16, %v484_v38 }
 0x25c   :  { %v499_v42 = vmul.f32 %v490_v20, %v483_v39 }
 0x25d   :  { %v505_v43 = vadd.f32 %v504_v40, %v503_v36 }
 0x25e   :  { %v508_v37 = vadd.f32 %v500_v41, %v499_v42 }
 0x25f   :  { %v506_v44 = vrot.slane %v505_v43, 1 }
 0x260   :  { %v509_v45 = vrot.slane %v508_v37, 4 }
 0x261   :  { %v507_v46 = vadd.f32 %v506_v44, %v505_v43 }
 0x262   :  { %v510_v47 = vadd.f32 %v509_v45, %v508_v37 }
 0x263   :  { %515 = vst [vmem:[#allocation8] sm:$0x1] %v507_v46 }
 0x264   :  { %v511_v50 = vrot.slane %v510_v47, 2 }
 0x266   :  { %v512_v51 = vadd.f32 %v511_v50, %v510_v47 }
 0x268   :  { %v513_v52 = vrot.slane %v512_v51, 1 }
 0x26a   :  { %v514_v53 = vadd.f32 %v513_v52, %v512_v51 }
 0x26c   :  { %516 = vst [vmem:[#allocation8 + $0x1] sm:$0x1] %v514_v53 }
 0x26d   :  { %542 = dma.vmem_to_hbm [thread:$0]  %s535_s3, 32, %s537_s22, [#allocation9], %s713_s23, %s713_s23, %s714_s24  }
 0x2c5   :  { %v365_v57 = vpop.f32.mrf.mxu1 }
 0x2c6   :  { %v558_v58 = vmul.f32 -1.442695, %v365_v57 }
 0x2c8   :  { %595 = vpow2.f32 %v558_v58 }
 0x2ce   :  { %v596_v59 = vpop.eup %595 }
 0x2cf   :  { %v371_v60 = vadd.f32 1.0, %v596_v59 }
 0x2d1   :  { %597 = vrcp.f32 %v371_v60  ;;  %v383_v18 = vand.u32 2147483648, %v371_v60  ;;  %v381_v54 = vand.u32 2147483647, %v371_v60  ;;  %vm377_vm7 = vweird.f32 %v371_v60 }
 0x2d3   :  { %v384_v48 = vor.u32 1.1754944e-38, %v383_v18  ;;  %vm382_vm9 = vcmp.eq.f32.partialorder %v381_v54, 8.507059e+37 }
 0x2d7   :  { %v598_v61 = vpop.eup %597 }
 0x2d8   :  { %v373_v0 = vmul.f32 %v598_v61, %v371_v60  ;;  %vm378_vm6 = vweird.f32 %v598_v61 }
 0x2d9   :  { %vm379_vm8 = vmor %vm377_vm7, %vm378_vm6 }
 0x2da   :  { %v374_v1 = vsub.f32 1.0, %v373_v0 }
 0x2dc   :  { %v375_v19 = vmul.f32 %v598_v61, %v374_v1 }
 0x2de   :  { %v376_v16 = vadd.f32 %v598_v61, %v375_v19 }
 0x2e0   :  { %v380_v20 = vsel %vm379_vm8, %v598_v61, %v376_v16 }
 0x2e1   :  { %v385_v21 = vsel %vm382_vm9, %v384_v48, %v380_v20 }
 0x2e2   :  { %v400_v22 = vperm.slane %v385_v21, 1  ;;  %v387_v23 = vperm.slane %v385_v21, 0 }
 0x2e4   :  { %411 = vperm.xlu2 %577, %v400_v22   ;;  %392 = vperm.xlu0 %574, %v387_v23  }
 0x2e5   :  { %405 = vperm.xlu1 %576, %v400_v22  }
 0x2ec   :  { %575 = vset.pattern.permute.xlu0 %v396_v56 }
 0x2f4   :  { %398 = vperm.xlu0 %575, %v387_v23  }
 0x2fc   :  { %578 = vset.pattern.permute.xlu0 %v711_v17 }
 0x33e   :  { %v412_v24 = vpop.permute.xlu2 %411 }
 0x33f   :  { %v425_v25 = vmul.f32 %v412_v24, %v800_v14  ;;  %v426_v26 = vmul.f32 %v412_v24, %v802_v15  ;;  %v427_v27 = vmul.f32 %v412_v24, %v796_v12  ;;  %v428_v28 = vmul.f32 %v412_v24, %v798_v13 }
 0x341   :  { %441 = vst [vmem:[#allocation7 + $0x60] sm:$0xff] %v425_v25 }
 0x342   :  { %442 = vst [vmem:[#allocation7 + $0x68] sm:$0xff] %v426_v26 }
 0x343   :  { %443 = vst [vmem:[#allocation7 + $0x70] sm:$0xff] %v427_v27 }
 0x344   :  { %444 = vst [vmem:[#allocation7 + $0x78] sm:$0xff] %v428_v28 }
 0x356   :  { %v393_v29 = vpop.permute.xlu0 %392 }
 0x357   :  { %v413_v30 = vmul.f32 %v393_v29, %v764_v2  ;;  %v414_v49 = vmul.f32 %v393_v29, %v766_v3  ;;  %v415_v17 = vmul.f32 %v393_v29, %v760_v62  ;;  %v406_v31 = vpop.permute.xlu1 %405  ;;  %v416_v14 = vmul.f32 %v393_v29, %v762_v63 }
 0x358   :  { %v421_v15 = vmul.f32 %v406_v31, %v788_v10  ;;  %v422_v12 = vmul.f32 %v406_v31, %v790_v11  ;;  %v423_v13 = vmul.f32 %v406_v31, %v784_v8  ;;  %v424_v32 = vmul.f32 %v406_v31, %v786_v9 }
 0x359   :  { %429 = vst [vmem:[#allocation7] sm:$0xff] %v413_v30 }
 0x35a   :  { %430 = vst [vmem:[#allocation7 + $0x8] sm:$0xff] %v414_v49 }
 0x35b   :  { %431 = vst [vmem:[#allocation7 + $0x10] sm:$0xff] %v415_v17 }
 0x35c   :  { %432 = vst [vmem:[#allocation7 + $0x18] sm:$0xff] %v416_v14 }
 0x35d   :  { %437 = vst [vmem:[#allocation7 + $0x40] sm:$0xff] %v421_v15 }
 0x35e   :  { %438 = vst [vmem:[#allocation7 + $0x48] sm:$0xff] %v422_v12 }
 0x35f   :  { %439 = vst [vmem:[#allocation7 + $0x50] sm:$0xff] %v423_v13 }
 0x360   :  { %440 = vst [vmem:[#allocation7 + $0x58] sm:$0xff] %v424_v32 }
 0x366   :  { %v399_v62 = vpop.permute.xlu0 %398 }
 0x367   :  { %v417_v2 = vmul.f32 %v399_v62, %v776_v6  ;;  %v418_v63 = vmul.f32 %v399_v62, %v778_v7  ;;  %v419_v3 = vmul.f32 %v399_v62, %v772_v4  ;;  %v420_v8 = vmul.f32 %v399_v62, %v774_v5 }
 0x369   :  { %433 = vst [vmem:[#allocation7 + $0x20] sm:$0xff] %v417_v2 }
 0x36a   :  { %434 = vst [vmem:[#allocation7 + $0x28] sm:$0xff] %v418_v63 }
 0x36b   :  { %435 = vst [vmem:[#allocation7 + $0x30] sm:$0xff] %v419_v3 }
 0x36c   :  { %436 = vst [vmem:[#allocation7 + $0x38] sm:$0xff] %v420_v8 }
 0x36d   :  { %529 = dma.vmem_to_hbm [thread:$0]  %s522_s25, 2048, %s524_s28, [#allocation4], %s704_s29, %s704_s29, %s705_s30  }
 0x36e   :  { %699 = dma.done.wait [#allocation4], 2048  }
 0x36f   :  { %700 = vsyncadd [#allocation4], 4294965248 }
 0x370   :  { %701 = dma.done.wait [#allocation9], 32  }
 0x371   :  { %702 = vsyncadd [#allocation9], 4294967264 }
 0x372   :  { %551 = vsyncpa [#allocation3], 1 }
 0x373   :  { %552 = vsyncpa [#allocation6], 1 }
 0x374   :  { %553 = vsyncpa [#allocation4], 1 }
 0x375   :  { %554 = vsyncpa [#allocation9], 1 }

</bundles_post_ra>
